<compile_context>
chip_gen: v7x
topology: tpu7x:2x2x1
jax: 0.10.0
libtpu: 0.0.40
codegen_flags: <defaults>
</compile_context>

<pallas_src>
import functools

import jax
import jax.numpy as jnp
from jax.experimental import pallas as pl
from jax.experimental.pallas import tpu as pltpu


def _round_up(n, m):
    return ((n + m - 1) // m) * m


def _device_kind():
    try:
        return jax.devices()[0].device_kind.lower()
    except Exception:
        return ""


def _default_block_b():
    kind = _device_kind()
    # v5e: 4x128^2 MXU + single vector-store slot -> 128-row tiles map exactly.
    if "v5 lite" in kind or "v5e" in kind or "v5lite" in kind:
        return 128
    # v6e: per-step overhead dominates at small tiles; ~512 is near HBM roofline.
    if "v6" in kind:
        return 512
    # v7x / default.
    return 256


def _num_tensorcores():
    kind = _device_kind()
    return 2 if ("v7" in kind or "7x" in kind) else 1


def mlp_kernel(x_ref, w1_ref, b1_ref, w2_ref, b2_ref, w3_ref, b3_ref, o_ref,
               *, out_via_reduce):
    # Layer 1: [TM, In](bf16) @ [In, H](bf16) -> f32 acc, + bias, ReLU.
    h1 = jnp.dot(x_ref[...], w1_ref[...], preferred_element_type=jnp.float32)
    h1 = jnp.maximum(h1 + b1_ref[...], 0.0)

    # Layer 2: [TM, H] @ [H, H] + bias -> ReLU (bf16 operands, f32 acc).
    h2 = jnp.dot(h1.astype(w2_ref.dtype), w2_ref[...],
                 preferred_element_type=jnp.float32)
    h2 = jnp.maximum(h2 + b2_ref[...], 0.0)

    # Layer 3.
    if out_via_reduce:
        # out_size == 1: w3 is a lane-aligned f32 [1, H] row.  VPU multiply +
        # XLU lane reduction instead of a ~1%-utilized MXU matvec.
        h3 = jnp.sum(h2 * w3_ref[...], axis=-1, keepdims=True)      # [TM, 1]
        # Lane-dense store: transpose to [1, TM] (batch on the lane axis) so
        # the output stores as full-width vst instead of masked vst.msk.
        o_ref[...] = (h3.T + b3_ref[...]).astype(o_ref.dtype)        # [1, TM]
    else:
        h3 = jnp.dot(h2.astype(w3_ref.dtype), w3_ref[...],
                     preferred_element_type=jnp.float32)
        o_ref[...] = (h3 + b3_ref[...]).astype(o_ref.dtype)


def mlp_forward(x, w1, b1, w2, b2, w3, b3, *, block_b=None,
                compute_dtype=jnp.bfloat16):
    """x: [B, In]; w_i pre-transposed [in, out]; b_i [1, out]. Returns [B, Out] f32."""
    B, in_size = x.shape
    hidden = w1.shape[1]
    out_size = w3.shape[1]
    out_via_reduce = (out_size == 1)

    if block_b is None:
        block_b = _default_block_b()
    n_cores = _num_tensorcores()

    # bf16 operands for the MXU layers; biases stay f32 (f32 accumulate in-kernel).
    x_c = x.astype(compute_dtype)
    w1_c = w1.astype(compute_dtype)
    w2_c = w2.astype(compute_dtype)
    # out_size==1: pass w3 as a lane-aligned f32 [1, H] row (VPU path, no bf16
    # roundtrip -> no extra precision loss).
    w3_c = w3.T.astype(jnp.float32) if out_via_reduce else w3.astype(compute_dtype)

    # Batch tiling (no padding copy of x: ragged final blocks are handled by
    # the Pallas pipeline).  Multi-tile TM must be a multiple of 128 so the
    # lane-dense [1, TM] output block satisfies the lane constraint; a single
    # tile covering all of B is always legal (block == full array dims).
    if n_cores > 1 and B >= 2 * 128:
        # v7x: keep >= 2 grid steps so both TensorCores get work.
        block_b = min(block_b, _round_up(pl.cdiv(B, n_cores), 128))
    if B <= block_b:
        tm, nb = B, 1
    else:
        tm = max(128, (block_b // 128) * 128)
        nb = pl.cdiv(B, tm)

    in_specs = [
        pl.BlockSpec((tm, in_size), lambda i: (i, 0)),   # x: batch-tiled
        pl.BlockSpec(w1_c.shape, lambda i: (0, 0)),      # weights / biases:
        pl.BlockSpec(b1.shape, lambda i: (0, 0)),        # full blocks, resident
        pl.BlockSpec(w2_c.shape, lambda i: (0, 0)),      # across the batch grid
        pl.BlockSpec(b2.shape, lambda i: (0, 0)),
        pl.BlockSpec(w3_c.shape, lambda i: (0, 0)),
        pl.BlockSpec(b3.shape, lambda i: (0, 0)),
    ]

    if out_via_reduce:
        # Lane-dense output: [1, B] with the batch on the lane axis.
        out_shape = jax.ShapeDtypeStruct((1, B), jnp.float32)
        out_specs = pl.BlockSpec((1, tm), lambda i: (0, i))
    else:
        out_shape = jax.ShapeDtypeStruct((B, out_size), jnp.float32)
        out_specs = pl.BlockSpec((tm, out_size), lambda i: (i, 0))

    # Advisory cost so XLA overlaps the surrounding casts / transpose.
    flops = 2 * B * (in_size * hidden + hidden * hidden + hidden * out_size)
    bytes_accessed = (
        B * in_size * jnp.dtype(compute_dtype).itemsize            # x
        + B * out_size * 4                                          # out
        + (in_size * hidden + hidden * hidden) * jnp.dtype(compute_dtype).itemsize
        + hidden * out_size * 4                                     # w3 (f32 row)
        + (hidden + hidden + out_size) * 4)                         # biases
    cost = pl.CostEstimate(flops=flops, transcendentals=0,
                           bytes_accessed=bytes_accessed)

    out = pl.pallas_call(
        functools.partial(mlp_kernel, out_via_reduce=out_via_reduce),
        out_shape=out_shape,
        grid_spec=pltpu.PrefetchScalarGridSpec(
            num_scalar_prefetch=0,
            grid=(nb,),
            in_specs=in_specs,
            out_specs=out_specs,
        ),
        compiler_params=pltpu.CompilerParams(
            # Batch tiles are independent: let multi-TC chips split them.
            dimension_semantics=("parallel",),
        ),
        cost_estimate=cost,
    )(x_c, w1_c, b1, w2_c, b2, w3_c, b3)

    # Lane-dense path returns [1, B]; present it as the module's [B, 1].
    return out.T if out_via_reduce else out


def init_linear(key, in_features, out_features):
    """Deterministic init mimicking nn.Linear's U(-1/sqrt(in), 1/sqrt(in)).
    Returns weight as [in_features, out_features] (pre-transposed) and bias [1, out]."""
    kw, kb = jax.random.split(key)
    bound = 1.0 / jnp.sqrt(in_features)
    w = jax.random.uniform(kw, (in_features, out_features), jnp.float32, -bound, bound)
    b = jax.random.uniform(kb, (1, out_features), jnp.float32, -bound, bound)
    return w, b


if __name__ == "__main__":
    hidden_size = 128
    output_size = 1
    input_size = 32
    batch = 8

    key = jax.random.PRNGKey(0)
    kx, k1, k2, k3 = jax.random.split(key, 4)

    x = jax.random.normal(kx, (batch, input_size), jnp.float32)
    w1, b1 = init_linear(k1, input_size, hidden_size)
    w2, b2 = init_linear(k2, hidden_size, hidden_size)
    w3, b3 = init_linear(k3, hidden_size, output_size)

    out = mlp_forward(x, w1, b1, w2, b2, w3, b3)
    out = jax.block_until_ready(out)
    assert out.shape == (batch, output_size), out.shape

    # Reference 1: mirrors the kernel path (bf16 MXU operands, f32 acc, f32 w3 reduce).
    xb = x.astype(jnp.bfloat16)
    w1b, w2b = w1.astype(jnp.bfloat16), w2.astype(jnp.bfloat16)
    h1 = jnp.maximum(jnp.dot(xb, w1b, preferred_element_type=jnp.float32) + b1, 0.0)
    h2 = jnp.maximum(
        jnp.dot(h1.astype(jnp.bfloat16), w2b, preferred_element_type=jnp.float32) + b2,
        0.0)
    ref_bf16 = jnp.sum(h2 * w3.T, axis=-1, keepdims=True) + b3
    assert jnp.allclose(out, ref_bf16, atol=1e-4, rtol=1e-4), "mismatch vs bf16-path ref"

    # Reference 2: original full-f32 module math (loose tolerance for bf16 operands).
    h1f = jnp.maximum(x @ w1 + b1, 0.0)
    h2f = jnp.maximum(h1f @ w2 + b2, 0.0)
    ref_f32 = h2f @ w3 + b3
    assert jnp.allclose(out, ref_f32, atol=5e-2, rtol=5e-2), "mismatch vs f32 ref"

    print("KERNEL_OK")
</pallas_src>

<mosaic_0001>
module attributes {stable_mosaic.version = 11 : i64} {
  func.func @mlp_kernel(%arg0: i32, %arg1: memref<8x32xbf16, #tpu.memory_space<vmem>>, %arg2: memref<32x128xbf16, #tpu.memory_space<vmem>>, %arg3: memref<1x128xf32, #tpu.memory_space<vmem>>, %arg4: memref<128x128xbf16, #tpu.memory_space<vmem>>, %arg5: memref<1x128xf32, #tpu.memory_space<vmem>>, %arg6: memref<1x128xf32, #tpu.memory_space<vmem>>, %arg7: memref<1x1xf32, #tpu.memory_space<vmem>>, %arg8: memref<1x8xf32, #tpu.memory_space<vmem>>) attributes {dimension_semantics = [#tpu.dimension_semantics<parallel>], iteration_bounds = array<i64: 1>, scalar_prefetch = 0 : i64, scratch_operands = 0 : i64, tpu.core_type = #tpu.core_type<tc>, window_params = [{transform_indices = @transform_0, window_bounds = array<i64: 8, 32>}, {pipeline_mode = #tpu.pipeline_mode<synchronous>, transform_indices = @transform_1, window_bounds = array<i64: 32, 128>}, {pipeline_mode = #tpu.pipeline_mode<synchronous>, transform_indices = @transform_2, window_bounds = array<i64: 1, 128>}, {pipeline_mode = #tpu.pipeline_mode<synchronous>, transform_indices = @transform_3, window_bounds = array<i64: 128, 128>}, {pipeline_mode = #tpu.pipeline_mode<synchronous>, transform_indices = @transform_4, window_bounds = array<i64: 1, 128>}, {pipeline_mode = #tpu.pipeline_mode<synchronous>, transform_indices = @transform_5, window_bounds = array<i64: 1, 128>}, {pipeline_mode = #tpu.pipeline_mode<synchronous>, transform_indices = @transform_6, window_bounds = array<i64: 1, 1>}, {transform_indices = @transform_7, window_bounds = array<i64: 1, 8>}]} {
    %c0 = arith.constant 0 : index
    %c0_0 = arith.constant 0 : index
    %0 = vector.load %arg1[%c0, %c0_0] : memref<8x32xbf16, #tpu.memory_space<vmem>>, vector<8x32xbf16>
    %c0_1 = arith.constant 0 : index
    %c0_2 = arith.constant 0 : index
    %1 = vector.load %arg2[%c0_1, %c0_2] : memref<32x128xbf16, #tpu.memory_space<vmem>>, vector<32x128xbf16>
    %cst = arith.constant dense<0.000000e+00> : vector<8x128xf32>
    %2 = tpu.matmul %0, %1, %cst {dimension_numbers = #tpu.dot_dimension_numbers<[1], [0], [0], [1], [0, 0, 1, 1], [], []>} : vector<8x32xbf16>, vector<32x128xbf16>, vector<8x128xf32> -> vector<8x128xf32>
    %c0_3 = arith.constant 0 : index
    %c0_4 = arith.constant 0 : index
    %3 = vector.load %arg3[%c0_3, %c0_4] : memref<1x128xf32, #tpu.memory_space<vmem>>, vector<1x128xf32>
    %4 = vector.broadcast %3 : vector<1x128xf32> to vector<8x128xf32>
    %5 = arith.addf %2, %4 : vector<8x128xf32>
    %cst_5 = arith.constant 0.000000e+00 : f32
    %6 = vector.broadcast %cst_5 : f32 to vector<8x128xf32>
    %7 = arith.maximumf %5, %6 : vector<8x128xf32>
    %8 = arith.truncf %7 : vector<8x128xf32> to vector<8x128xbf16>
    %c0_6 = arith.constant 0 : index
    %c0_7 = arith.constant 0 : index
    %9 = vector.load %arg4[%c0_6, %c0_7] : memref<128x128xbf16, #tpu.memory_space<vmem>>, vector<128x128xbf16>
    %cst_8 = arith.constant dense<0.000000e+00> : vector<8x128xf32>
    %10 = tpu.matmul %8, %9, %cst_8 {dimension_numbers = #tpu.dot_dimension_numbers<[1], [0], [0], [1], [0, 0, 1, 1], [], []>} : vector<8x128xbf16>, vector<128x128xbf16>, vector<8x128xf32> -> vector<8x128xf32>
    %c0_9 = arith.constant 0 : index
    %c0_10 = arith.constant 0 : index
    %11 = vector.load %arg5[%c0_9, %c0_10] : memref<1x128xf32, #tpu.memory_space<vmem>>, vector<1x128xf32>
    %12 = vector.broadcast %11 : vector<1x128xf32> to vector<8x128xf32>
    %13 = arith.addf %10, %12 : vector<8x128xf32>
    %cst_11 = arith.constant 0.000000e+00 : f32
    %14 = vector.broadcast %cst_11 : f32 to vector<8x128xf32>
    %15 = arith.maximumf %13, %14 : vector<8x128xf32>
    %c0_12 = arith.constant 0 : index
    %c0_13 = arith.constant 0 : index
    %16 = vector.load %arg6[%c0_12, %c0_13] : memref<1x128xf32, #tpu.memory_space<vmem>>, vector<1x128xf32>
    %17 = vector.broadcast %16 : vector<1x128xf32> to vector<8x128xf32>
    %18 = arith.mulf %15, %17 : vector<8x128xf32>
    %cst_14 = arith.constant dense<0.000000e+00> : vector<8xf32>
    %19 = vector.multi_reduction <add>, %18, %cst_14 [1] : vector<8x128xf32> to vector<8xf32>
    %20 = vector.shape_cast %19 : vector<8xf32> to vector<8x1xf32>
    %21 = tpu.transpose %20, [1, 0] : vector<8x1xf32> -> vector<1x8xf32>
    %c0_15 = arith.constant 0 : index
    %c0_16 = arith.constant 0 : index
    %22 = vector.load %arg7[%c0_15, %c0_16] : memref<1x1xf32, #tpu.memory_space<vmem>>, vector<1x1xf32>
    %23 = vector.broadcast %22 : vector<1x1xf32> to vector<1x8xf32>
    %24 = arith.addf %21, %23 : vector<1x8xf32>
    %c0_17 = arith.constant 0 : index
    %c0_18 = arith.constant 0 : index
    %25 = vector.load %arg8[%c0_17, %c0_18] : memref<1x8xf32, #tpu.memory_space<vmem>>, vector<1x8xf32>
    tpu.vector_store %arg8[%c0_17, %c0_18], %24 {strides = array<i32>} : memref<1x8xf32, #tpu.memory_space<vmem>>, vector<1x8xf32>,
    return
  }
  func.func @transform_0(%arg0: i32) -> (i32, i32) {
    %c0_i32 = arith.constant 0 : i32
    %c0_i32_0 = arith.constant 0 : i32
    return %arg0, %c0_i32 : i32, i32
  }
  func.func @transform_1(%arg0: i32) -> (i32, i32) {
    %c0_i32 = arith.constant 0 : i32
    %c0_i32_0 = arith.constant 0 : i32
    %c0_i32_1 = arith.constant 0 : i32
    return %c0_i32, %c0_i32_0 : i32, i32
  }
  func.func @transform_2(%arg0: i32) -> (i32, i32) {
    %c0_i32 = arith.constant 0 : i32
    %c0_i32_0 = arith.constant 0 : i32
    %c0_i32_1 = arith.constant 0 : i32
    return %c0_i32, %c0_i32_0 : i32, i32
  }
  func.func @transform_3(%arg0: i32) -> (i32, i32) {
    %c0_i32 = arith.constant 0 : i32
    %c0_i32_0 = arith.constant 0 : i32
    %c0_i32_1 = arith.constant 0 : i32
    return %c0_i32, %c0_i32_0 : i32, i32
  }
  func.func @transform_4(%arg0: i32) -> (i32, i32) {
    %c0_i32 = arith.constant 0 : i32
    %c0_i32_0 = arith.constant 0 : i32
    %c0_i32_1 = arith.constant 0 : i32
    return %c0_i32, %c0_i32_0 : i32, i32
  }
  func.func @transform_5(%arg0: i32) -> (i32, i32) {
    %c0_i32 = arith.constant 0 : i32
    %c0_i32_0 = arith.constant 0 : i32
    %c0_i32_1 = arith.constant 0 : i32
    return %c0_i32, %c0_i32_0 : i32, i32
  }
  func.func @transform_6(%arg0: i32) -> (i32, i32) {
    %c0_i32 = arith.constant 0 : i32
    %c0_i32_0 = arith.constant 0 : i32
    %c0_i32_1 = arith.constant 0 : i32
    return %c0_i32, %c0_i32_0 : i32, i32
  }
  func.func @transform_7(%arg0: i32) -> (i32, i32) {
    %c0_i32 = arith.constant 0 : i32
    %c0_i32_0 = arith.constant 0 : i32
    return %c0_i32, %arg0 : i32, i32
  }
}

</mosaic_0001>

<bundles_post_ra>
// kernel: tpu_custom_call.1
= control target key start
LH: loop header
LB: loop body
LE: loop exit
PB: predicated region body
PF: predicated region fallthrough
CT: control target
= control target key end

     0   :  { %s605_s0 = inlined_call_operand.hbm [shape: bf16[8,32], index: 0, kind: input, shape index: {}]   ;;  %s606_s1 = inlined_call_operand.hbm [shape: bf16[32,128], index: 1, kind: input, shape index: {}]   ;;  %s607_s2 = inlined_call_operand.vmem [shape: f32[1,128], index: 2, kind: input, shape index: {}]   ;;  %s608_s3 = inlined_call_operand.hbm [shape: bf16[128,128], index: 3, kind: input, shape index: {}]   ;;  %s609_s4 = inlined_call_operand.vmem [shape: f32[1,128], index: 4, kind: input, shape index: {}]   ;;  %s610_s5 = inlined_call_operand.vmem [shape: f32[1,128], index: 5, kind: input, shape index: {}]   ;;  %s611_s6 = inlined_call_operand.<no memory space> [shape: f32[1,1], index: 6, kind: input, shape index: {}]   ;;  %s612_s7 = inlined_call_operand.hbm [shape: f32[1,8], index: 7, kind: output, shape index: {}]  }
   0x1   :  { %v12_v0 = vstv %s611_s6 }
   0x2   :  { %13 = vst [vmem:[#allocation2] sm:$0x1] %v12_v0 }
   0x3   :  { %14 = vsyncpa [#allocation4], 0 }
   0x4   :  { %15 = vsyncpa [#allocation7], 0 }
   0x5   :  { %16 = vsyncpa [#allocation5], 0  ;;  %s490_s26 = smov [#allocation6]   ;;  %s396_s30 = scalar_lea.hbm %s606_s1, 256 }
   0x6   :  { %s32_s27 = sshll.u32 %s490_s26, 4  ;;  %p397_p0 = scmp.ne.s32.totalorder %s606_s1, %s396_s30  ;;  %s33_s27 = int_to_ptr.vmem [resolvable:$true] %s32_s27 }
   0x7   :  { %p400_p1 = scmp.lt.u32.totalorder %s396_s30, %s606_s1 }
   0x9   :  { %p402_p2 = pnand %p400_p1, %p397_p0 }
   0xb   :  { %405 = shalt.err (!%p402_p2)
}
   0xc   :  { %s406_s6 = scalar_lea.vmem %s33_s27, 256  ;;  %p411_p4 = scmp.lt.s32.totalorder %s33_s27, %s33_s27 }
   0xd   :  { %p407_p3 = scmp.ne.s32.totalorder %s33_s27, %s406_s6  ;;  %p412_p5 = scmp.lt.s32.totalorder %s406_s6, %s406_s6 }
   0xf   :  { %p413_p6 = por %p412_p5, %p411_p4 }
  0x11   :  { %p414_p7 = pnand %p413_p6, %p407_p3 }
  0x13   :  { %417 = shalt.err (!%p414_p7)
}
  0x14   :  { %s491_s12 = smov 64   ;;  %s492_s13 = smov 4  }
  0x15   :  { %38 = dma.hbm_to_vmem [thread:$0]  %s606_s1, 256, %s33_s27, [#allocation7], %s491_s12, %s491_s12, %s492_s13  }
  0x16   :  { %s493_s16 = smov [#allocation3]   ;;  %s494_s18 = smov [#allocation8]  }
  0x17   :  { %s23_s17 = sshll.u32 %s493_s16, 4  ;;  %s46_s19 = sshll.u32 %s494_s18, 4  ;;  %s24_s17 = int_to_ptr.vmem [resolvable:$true] %s23_s17  ;;  %s47_s19 = int_to_ptr.vmem [resolvable:$true] %s46_s19 }
  0x18   :  { %s418_s22 = scalar_lea.hbm %s605_s0, 64 }
  0x19   :  { %p419_p8 = scmp.ne.s32.totalorder %s605_s0, %s418_s22  ;;  %p422_p9 = scmp.lt.u32.totalorder %s418_s22, %s605_s0 }
  0x1b   :  { %p424_p10 = pnand %p422_p9, %p419_p8 }
  0x1d   :  { %427 = shalt.err (!%p424_p10)
}
  0x1e   :  { %s428_s1 = scalar_lea.vmem %s24_s17, 64  ;;  %p433_p12 = scmp.lt.s32.totalorder %s24_s17, %s24_s17 }
  0x1f   :  { %p429_p11 = scmp.ne.s32.totalorder %s24_s17, %s428_s1  ;;  %p434_p13 = scmp.lt.s32.totalorder %s428_s1, %s428_s1 }
  0x21   :  { %p435_p0 = por %p434_p13, %p433_p12 }
  0x23   :  { %p436_p1 = pnand %p435_p0, %p429_p11 }
  0x25   :  { %439 = shalt.err (!%p436_p1)
}
  0x26   :  { %26 = dma.hbm_to_vmem [thread:$0]  %s605_s0, 64, %s24_s17, [#allocation4]  }
  0x27   :  { %s440_s8 = scalar_lea.hbm %s608_s3, 1024 }
  0x28   :  { %p441_p2 = scmp.ne.s32.totalorder %s608_s3, %s440_s8  ;;  %p444_p3 = scmp.lt.u32.totalorder %s440_s8, %s608_s3 }
  0x2a   :  { %p446_p4 = pnand %p444_p3, %p441_p2 }
  0x2c   :  { %449 = shalt.err (!%p446_p4)
}
  0x2d   :  { %s450_s14 = scalar_lea.vmem %s47_s19, 1024  ;;  %p455_p6 = scmp.lt.s32.totalorder %s47_s19, %s47_s19 }
  0x2e   :  { %p451_p5 = scmp.ne.s32.totalorder %s47_s19, %s450_s14  ;;  %p456_p7 = scmp.lt.s32.totalorder %s450_s14, %s450_s14 }
  0x30   :  { %p457_p8 = por %p456_p7, %p455_p6 }
  0x32   :  { %p458_p9 = pnand %p457_p8, %p451_p5 }
  0x34   :  { %461 = shalt.err (!%p458_p9)
}
  0x35   :  { %52 = dma.hbm_to_vmem [thread:$0]  %s608_s3, 1024, %s47_s19, [#allocation7], %s491_s12, %s491_s12, %s492_s13  }
  0x36   :  { %484 = dma.done.wait [#allocation4], 64  }
  0x37   :  { %485 = vsyncadd [#allocation4], 4294967232 }
  0x38   :  { %486 = dma.done.wait [#allocation7], 1280  }
  0x39   :  { %487 = vsyncadd [#allocation7], 4294966016  ;;  %v495_v1 = vmov 0.0   ;;  %vm496_vm0 = vmmov 0   ;;  %v386_v2 = vld [vmem:[#allocation6] sm:$0xff]   ;;  %v387_v3 = vld [vmem:[#allocation6 + $0x8] sm:$0xff]   ;;  %v299_v33 = vlaneseq }
  0x3a   :  { %348 = vmatprep.subr.bf16.mxu0 %v495_v1  ;;  %352 = vmatprep.mubr.msk.bf16.mxu0 %vm496_vm0, %v495_v1  ;;  %v388_v4 = vld [vmem:[#allocation8] sm:$0xff]   ;;  %vm93_vm1 = vcmask 261120   ;;  %v389_v5 = vld [vmem:[#allocation8 + $0x8] sm:$0xff]   ;;  %v390_v7 = vld [vmem:[#allocation8 + $0x10] sm:$0xff]   ;;  %v497_v21 = vmov 0   ;;  %vm304_vm2 = vcmask 57344  }
  0x3b   :  { %356 = vmatprep.subr.bf16.mxu1 %v495_v1  ;;  %372 = vmatprep.mubr.msk.bf16.mxu1 %vm496_vm0, %v495_v1  ;;  %v69_v6 = vld [vmem:[#allocation3] sm:$0xf]  ;;  %v391_v8 = vld [vmem:[#allocation8 + $0x18] sm:$0xff]   ;;  %v392_v9 = vld [vmem:[#allocation8 + $0x20] sm:$0xff]   ;;  %v300_v34 = vshrl.u32 %v299_v33, 7 }
  0x3c   :  { %349 = vmatpush3.bf16.msra.mxu0 %v386_v2  ;;  %357 = vmatpush3.bf16.msra.mxu1 %v388_v4  ;;  %v393_v10 = vld [vmem:[#allocation8 + $0x28] sm:$0xff]   ;;  %v394_v11 = vld [vmem:[#allocation8 + $0x30] sm:$0xff]   ;;  %v395_v12 = vld [vmem:[#allocation8 + $0x38] sm:$0xff]  }
  0x3d   :  { %350 = vmatprep.subr.bf16.mxu0 %v495_v1  ;;  %358 = vmatprep.subr.bf16.mxu1 %v495_v1  ;;  %v322_v13 = vld [vmem:[%s607_s2] ss:$0 sm:$0xff]  ;;  %v301_v35 = vsub.s32 0, %v300_v34 }
  0x3e   :  { %385 = vset.pattern.permute.xlu0 %v497_v21  ;;  %v326_v22 = vld [vmem:[%s609_s4] ss:$0 sm:$0xff]  ;;  %s498_s4 = smov [#allocation9]  }
  0x3f   :  { %v335_v27 = vld [vmem:[%s610_s5] ss:$0 sm:$0xff]  ;;  %s312_s18 = sshll.u32 %s498_s4, 4  ;;  %s313_s18 = int_to_ptr.vmem [resolvable:$true] %s312_s18 }
  0x40   :  { %351 = vmatpush3.bf16.msra.mxu0 %v387_v3  ;;  %359 = vmatpush3.bf16.msra.mxu1 %v389_v5  ;;  %v293_v31 = vld [vmem:[#allocation2] sm:$0x1]  ;;  %s462_s5 = scalar_lea.vmem %s313_s18, 16  ;;  %s466_s19 = scalar_lea.vmem %s313_s18, 32 }
  0x41   :  { %360 = vmatprep.subr.bf16.mxu1 %v495_v1  ;;  %p463_p10 = scmp.ne.s32.totalorder %s313_s18, %s462_s5  ;;  %p467_p11 = scmp.lt.s32.totalorder %s313_s18, %s313_s18 }
  0x42   :  { %p468_p12 = scmp.lt.s32.totalorder %s466_s19, %s462_s5 }
  0x43   :  { %353 = vmatmul.mubr.msk.bf16.vlgmr.msra.gmra.mrb[0].mxu0 %vm93_vm1, %v69_v6 }
  0x44   :  { %361 = vmatpush3.bf16.msra.mxu1 %v390_v7  ;;  %p469_p13 = por %p468_p12, %p467_p11 }
  0x45   :  { %362 = vmatprep.subr.bf16.mxu1 %v495_v1 }
  0x46   :  { %p470_p0 = pnand %p469_p13, %p463_p10 }
  0x48   :  { %363 = vmatpush3.bf16.msra.mxu1 %v391_v8 }
  0x49   :  { %364 = vmatprep.subr.bf16.mxu1 %v495_v1 }
  0x4c   :  { %365 = vmatpush3.bf16.msra.mxu1 %v392_v9 }
  0x4d   :  { %366 = vmatprep.subr.bf16.mxu1 %v495_v1 }
  0x50   :  { %367 = vmatpush3.bf16.msra.mxu1 %v393_v10 }
  0x51   :  { %368 = vmatprep.subr.bf16.mxu1 %v495_v1 }
  0x54   :  { %369 = vmatpush3.bf16.msra.mxu1 %v394_v11 }
  0x55   :  { %370 = vmatprep.subr.bf16.mxu1 %v495_v1 }
  0x58   :  { %371 = vmatpush3.bf16.msra.mxu1 %v395_v12 }
 0x116   :  { %v131_v14 = vpop.f32.mrb[0].mxu0 }
 0x117   :  { %v132_v15 = vadd.f32 %v322_v13, %v131_v14  ;;  %v354_v16 = vpop.f32.mrb[1].mxu0 }
 0x118   :  { %v134_v17 = vpop.f32.mrb[2].mxu0 }
 0x119   :  { %v137_v18 = vmax.f32 %v132_v15, 0.0  ;;  %v355_v19 = vpop.f32.mrb[3].mxu0 }
 0x11b   :  { %v138_v20 = vpack.c.bf16 %v137_v18, %v137_v18 }
 0x11d   :  { %373 = vmatmul.mubr.bf16.vlgmr.msra.gmra.mrb[0].mxu1 %v138_v20 }
 0x1f0   :  { %v244_v23 = vpop.f32.mrb[0].mxu1 }
 0x1f1   :  { %v245_v24 = vadd.f32 %v326_v22, %v244_v23  ;;  %v374_v25 = vpop.f32.mrb[1].mxu1 }
 0x1f2   :  { %v247_v26 = vpop.f32.mrb[2].mxu1 }
 0x1f3   :  { %v250_v28 = vmax.f32 %v245_v24, 0.0  ;;  %v375_v29 = vpop.f32.mrb[3].mxu1 }
 0x1f5   :  { %v258_v30 = vmul.f32 %v335_v27, %v250_v28 }
 0x1f7   :  { %259 = vadd.xlane.f32.xlu0 %v258_v30 }
 0x20d   :  { %296 = vperm.xlu0 %385, %v293_v31  }
 0x284   :  { %v260_v32 = vpop.xlane.xlu0 %259 }
 0x285   :  { %261 = vxpose.xlu1.b32.start.end [1/1] (short) (narrow) %v260_v32, 8 }
 0x28c   :  { %v297_v36 = vpop.permute.xlu0 %296 }
 0x28d   :  { %v302_v37 = vrot.slane %v297_v36, %v301_v35 }
 0x305   :  { %v277_v38 = vpop.trf.xlu1 }
 0x306   :  { %v303_v39 = vadd.f32 %v302_v37, %v277_v38 }
 0x308   :  { %305 = vst.msk [vmem:[#allocation9] sm:$0x1] %vm304_vm2, %v303_v39 }
 0x309   :  { %473 = shalt.err (!%p470_p0)
}
 0x30a   :  { %s474_s22 = scalar_lea.hbm %s612_s7, 16 }
 0x30b   :  { %p475_p1 = scmp.ne.s32.totalorder %s612_s7, %s474_s22  ;;  %p478_p2 = scmp.lt.u32.totalorder %s474_s22, %s612_s7 }
 0x30d   :  { %p480_p3 = pnand %p478_p2, %p475_p1 }
 0x30f   :  { %483 = shalt.err (!%p480_p3)
}
 0x310   :  { %315 = dma.vmem_to_hbm [thread:$0]  %s313_s18, 16, %s612_s7, [#allocation5]  }
 0x311   :  { %488 = dma.done.wait [#allocation5], 16  }
 0x312   :  { %489 = vsyncadd [#allocation5], 4294967280 }
 0x313   :  { %319 = vsyncpa [#allocation4], 1 }
 0x314   :  { %320 = vsyncpa [#allocation7], 1 }
 0x315   :  { %321 = vsyncpa [#allocation5], 1 }

</bundles_post_ra>
